<compile_context>
chip_gen: v6e
topology: v6e:2x2x1
jax: 0.10.0
libtpu: 0.0.40
codegen_flags: <defaults>
</compile_context>

<pallas_src>
import functools

import jax
import jax.numpy as jnp
from jax.experimental import pallas as pl
from jax.experimental.pallas import tpu as pltpu


# ---------------------------------------------------------------------------
# Pallas kernel: fused conv-as-matmul + BatchNorm(eval), channels-first layout
# ---------------------------------------------------------------------------
def _conv_bn_kernel(x_ref, w_ref, scale_ref, shift_ref, o_ref):
    # x_ref:     (Kp, TILE_M)   im2col'd activations (channels-first), bf16
    # w_ref:     (Cout, Kp)     conv weight as a matrix, bf16
    # scale_ref: (Cout, 1)      fused BN scale = gamma / sqrt(var + eps), f32
    # shift_ref: (Cout, 1)      fused BN shift = beta - mean * scale,     f32
    # o_ref:     (Cout, TILE_M) f32, lane axis = spatial (lane-dense store)
    y = jnp.dot(w_ref[...], x_ref[...], preferred_element_type=jnp.float32)
    y = y * scale_ref[...] + shift_ref[...]          # BN broadcast along lanes
    o_ref[...] = y.astype(o_ref.dtype)


def _round_up(x, m):
    return ((x + m - 1) // m) * m


def conv_bn(x, weight, gamma, beta, mean, var, *, eps=1e-5, tile_m=1024,
            compute_dtype=jnp.bfloat16):
    """Fused Conv2d(stride=1, bias=False) + BatchNorm2d(eval) on NCHW input.

    Supports ksize=1 (pad 0) and ksize=3 (pad 1) — the only kernels used by
    the non-downsample HSBottleneck path. Returns float32 NCHW.
    """
    N, Cin, H, W = x.shape
    Cout, Cin_w, kh, kw = weight.shape
    assert Cin_w == Cin, (Cin_w, Cin)
    M = H * W

    # ---- conv -> channels-first matmul operands (no layout transposes) ----
    if (kh, kw) == (1, 1):
        xcol = x.reshape(N, Cin, M)
        wmat = weight.reshape(Cout, Cin)
    elif (kh, kw) == (3, 3):
        xpad = jnp.pad(x, ((0, 0), (0, 0), (1, 1), (1, 1)))
        cols = [xpad[:, :, dy:dy + H, dx:dx + W]
                for dy in range(3) for dx in range(3)]
        xcol = jnp.concatenate(cols, axis=1).reshape(N, 9 * Cin, M)
        # K index = (dy*3+dx)*Cin + ci  — matches the concat order above.
        wmat = jnp.transpose(weight, (0, 2, 3, 1)).reshape(Cout, 9 * Cin)
    else:
        raise NotImplementedError("HSBottleneck only uses ksize 1 and 3")

    K = xcol.shape[1]
    Kp = _round_up(K, 8)                                   # sublane-aligned K
    tm = _round_up(min(tile_m, _round_up(M, 128)), 128)    # lane-dense M tile
    Mp = _round_up(M, tm)

    xcol = jnp.pad(xcol, ((0, 0), (0, Kp - K), (0, Mp - M))).astype(compute_dtype)
    wmat = jnp.pad(wmat, ((0, 0), (0, Kp - K))).astype(compute_dtype)

    scale = (gamma / jnp.sqrt(var + eps)).astype(jnp.float32)
    shift = (beta - mean * scale).astype(jnp.float32)
    scale = scale.reshape(Cout, 1)
    shift = shift.reshape(Cout, 1)

    grid = (N, Mp // tm)
    out = pl.pallas_call(
        _conv_bn_kernel,
        out_shape=jax.ShapeDtypeStruct((N, Cout, Mp), jnp.float32),
        grid_spec=pltpu.PrefetchScalarGridSpec(
            num_scalar_prefetch=0,
            grid=grid,
            in_specs=[
                pl.BlockSpec((None, Kp, tm), lambda n, m: (n, 0, m)),
                pl.BlockSpec((Cout, Kp), lambda n, m: (0, 0)),
                pl.BlockSpec((Cout, 1), lambda n, m: (0, 0)),
                pl.BlockSpec((Cout, 1), lambda n, m: (0, 0)),
            ],
            out_specs=pl.BlockSpec((None, Cout, tm), lambda n, m: (n, 0, m)),
        ),
        compiler_params=pltpu.CompilerParams(
            dimension_semantics=("parallel", "parallel"),
        ),
    )(xcol, wmat, scale, shift)

    return out[:, :, :M].reshape(N, Cout, H, W)


# ---------------------------------------------------------------------------
# HSBottleneck forward (inc == outc, no downsample, not depthwise, act=relu)
# ---------------------------------------------------------------------------
def hs_bottleneck_forward(x, params, *, split_num=5, eps=1e-5, tile_m=1024,
                          compute_dtype=jnp.bfloat16):
    N, C, H, W = x.shape
    oi = C // split_num      # other_inc
    oo = oi                  # other_outc (inc == outc)

    cb = functools.partial(conv_bn, eps=eps, tile_m=tile_m,
                           compute_dtype=compute_dtype)

    # split 0: block_1 is None (inc == outc, no downsample) -> passthrough
    parts = [x[:, :oi]]

    # split 1: BaseConv(oi -> 2*oo, ksize=3, stride=1, act='no') = conv3x3 + BN
    p = params["split1"]
    y1 = cb(x[:, oi:2 * oi], p["w"], p["gamma"], p["beta"], p["mean"], p["var"])
    parts.append(y1[:, :oo])
    need = y1[:, oo:]

    # middle splits: cat(x_i, need) -> conv3x3 + BN, keep/emit the second half
    for idx, i in enumerate(range(2, split_num - 1)):
        p = params["middle"][idx]
        z = jnp.concatenate([x[:, oi * i:oi * (i + 1)], need], axis=1)
        yi = cb(z, p["w"], p["gamma"], p["beta"], p["mean"], p["var"])
        need = yi[:, oo:]
        parts.append(need)

    # last split: cat(x_last, need) -> conv1x1 + BN
    p = params["last"]
    z = jnp.concatenate([x[:, oi * (split_num - 1):], need], axis=1)
    parts.append(cb(z, p["w"], p["gamma"], p["beta"], p["mean"], p["var"]))

    out = jnp.concatenate(parts, axis=1)
    return jnp.maximum(out, 0.0)     # self.act = ReLU (module default)


def init_hs_bottleneck_params(key, inc, outc, split_num=5):
    """Deterministic synthetic Conv/BN parameters for the supported config."""
    assert inc == outc, "only the inc == outc HSBottleneck path is lowered"
    oi = inc // split_num
    oo = outc // split_num
    last_inc = inc // split_num + inc % split_num
    last_outc = outc // split_num + outc % split_num

    def conv_bn_params(k, cout, cin, ksize):
        kw_, kg, kb, km, kv = jax.random.split(k, 5)
        return dict(
            w=jax.random.normal(kw_, (cout, cin, ksize, ksize),
                                dtype=jnp.float32) * 0.1,
            gamma=1.0 + 0.1 * jax.random.normal(kg, (cout,), dtype=jnp.float32),
            beta=0.1 * jax.random.normal(kb, (cout,), dtype=jnp.float32),
            mean=0.1 * jax.random.normal(km, (cout,), dtype=jnp.float32),
            var=jnp.abs(jax.random.normal(kv, (cout,), dtype=jnp.float32)) + 0.5,
        )

    keys = jax.random.split(key, split_num)
    return {
        "split1": conv_bn_params(keys[1], 2 * oo, oi, 3),
        "middle": [conv_bn_params(keys[i], 2 * oo, 2 * oo, 3)
                   for i in range(2, split_num - 1)],
        "last": conv_bn_params(keys[split_num - 1], last_outc, last_inc + oo, 1),
    }


# ---------------------------------------------------------------------------
# Pure-JAX f32 reference (mirrors the PyTorch forward) for correctness checks
# ---------------------------------------------------------------------------
def _conv2d_ref(x, w, padding):
    return jax.lax.conv_general_dilated(
        x, w, window_strides=(1, 1),
        padding=((padding, padding), (padding, padding)),
        dimension_numbers=("NCHW", "OIHW", "NCHW"))


def _bn_ref(x, gamma, beta, mean, var, eps=1e-5):
    scale = gamma / jnp.sqrt(var + eps)
    shift = beta - mean * scale
    return x * scale[None, :, None, None] + shift[None, :, None, None]


def _reference_forward(x, params, *, split_num=5, eps=1e-5):
    N, C, H, W = x.shape
    oi = C // split_num
    oo = oi

    def conv_bn_f32(x_, p, pad):
        return _bn_ref(_conv2d_ref(x_, p["w"], pad), p["gamma"], p["beta"],
                       p["mean"], p["var"], eps)

    parts = [x[:, :oi]]
    y1 = conv_bn_f32(x[:, oi:2 * oi], params["split1"], 1)
    parts.append(y1[:, :oo])
    need = y1[:, oo:]
    for idx, i in enumerate(range(2, split_num - 1)):
        z = jnp.concatenate([x[:, oi * i:oi * (i + 1)], need], axis=1)
        yi = conv_bn_f32(z, params["middle"][idx], 1)
        need = yi[:, oo:]
        parts.append(need)
    z = jnp.concatenate([x[:, oi * (split_num - 1):], need], axis=1)
    parts.append(conv_bn_f32(z, params["last"], 0))
    return jnp.maximum(jnp.concatenate(parts, axis=1), 0.0)


if __name__ == "__main__":
    key = jax.random.PRNGKey(0)
    k_x, k_p = jax.random.split(key)

    # Small shapes consistent with the module: split_num=5 -> inc=outc=20
    # (4-channel splits), batch=2, 16x16 spatial.
    N, inc, H, W = 2, 20, 16, 16
    split_num = 5

    x = jax.random.normal(k_x, (N, inc, H, W), dtype=jnp.float32)
    params = init_hs_bottleneck_params(k_p, inc, inc, split_num)

    fwd = jax.jit(hs_bottleneck_forward, static_argnames=("split_num",))
    out = fwd(x, params, split_num=split_num)
    out = jax.block_until_ready(out)

    ref = _reference_forward(x, params, split_num=split_num)
    assert out.shape == (N, inc, H, W), out.shape
    max_err = float(jnp.max(jnp.abs(out - ref)))
    # bf16 activation/weight traffic with f32 accumulation -> loose tolerance.
    assert jnp.allclose(out, ref, atol=5e-2, rtol=5e-2), max_err

    print("KERNEL_OK")
</pallas_src>

<mosaic_0001>
module attributes {stable_mosaic.version = 11 : i64} {
  func.func @_conv_bn_kernel(%arg0: i32, %arg1: i32, %arg2: memref<1x40x256xbf16, #tpu.memory_space<vmem>>, %arg3: memref<8x40xbf16, #tpu.memory_space<vmem>>, %arg4: memref<8x1xf32, #tpu.memory_space<vmem>>, %arg5: memref<8x1xf32, #tpu.memory_space<vmem>>, %arg6: memref<1x8x256xf32, #tpu.memory_space<vmem>>) attributes {dimension_semantics = [#tpu.dimension_semantics<parallel>, #tpu.dimension_semantics<parallel>], iteration_bounds = array<i64: 2, 1>, scalar_prefetch = 0 : i64, scratch_operands = 0 : i64, tpu.core_type = #tpu.core_type<tc>, window_params = [{transform_indices = @transform_0, window_bounds = array<i64: 1, 40, 256>}, {pipeline_mode = #tpu.pipeline_mode<synchronous>, transform_indices = @transform_1, window_bounds = array<i64: 8, 40>}, {pipeline_mode = #tpu.pipeline_mode<synchronous>, transform_indices = @transform_2, window_bounds = array<i64: 8, 1>}, {pipeline_mode = #tpu.pipeline_mode<synchronous>, transform_indices = @transform_3, window_bounds = array<i64: 8, 1>}, {transform_indices = @transform_4, window_bounds = array<i64: 1, 8, 256>}]} {
    %c0 = arith.constant 0 : index
    %c0_0 = arith.constant 0 : index
    %0 = vector.load %arg3[%c0, %c0_0] : memref<8x40xbf16, #tpu.memory_space<vmem>>, vector<8x40xbf16>
    %c0_1 = arith.constant 0 : index
    %c0_2 = arith.constant 0 : index
    %c0_3 = arith.constant 0 : index
    %1 = vector.load %arg2[%c0_1, %c0_2, %c0_3] : memref<1x40x256xbf16, #tpu.memory_space<vmem>>, vector<1x40x256xbf16>
    %2 = vector.shape_cast %1 : vector<1x40x256xbf16> to vector<40x256xbf16>
    %cst = arith.constant dense<0.000000e+00> : vector<8x256xf32>
    %3 = tpu.matmul %0, %2, %cst {dimension_numbers = #tpu.dot_dimension_numbers<[1], [0], [0], [1], [0, 0, 1, 1], [], []>} : vector<8x40xbf16>, vector<40x256xbf16>, vector<8x256xf32> -> vector<8x256xf32>
    %c0_4 = arith.constant 0 : index
    %c0_5 = arith.constant 0 : index
    %4 = vector.load %arg4[%c0_4, %c0_5] : memref<8x1xf32, #tpu.memory_space<vmem>>, vector<8x1xf32>
    %5 = vector.broadcast %4 : vector<8x1xf32> to vector<8x256xf32>
    %6 = arith.mulf %3, %5 : vector<8x256xf32>
    %c0_6 = arith.constant 0 : index
    %c0_7 = arith.constant 0 : index
    %7 = vector.load %arg5[%c0_6, %c0_7] : memref<8x1xf32, #tpu.memory_space<vmem>>, vector<8x1xf32>
    %8 = vector.broadcast %7 : vector<8x1xf32> to vector<8x256xf32>
    %9 = arith.addf %6, %8 : vector<8x256xf32>
    %c0_8 = arith.constant 0 : index
    %c0_9 = arith.constant 0 : index
    %c0_10 = arith.constant 0 : index
    %10 = vector.load %arg6[%c0_8, %c0_9, %c0_10] : memref<1x8x256xf32, #tpu.memory_space<vmem>>, vector<1x8x256xf32>
    %11 = vector.shape_cast %10 : vector<1x8x256xf32> to vector<8x256xf32>
    %12 = vector.shape_cast %9 : vector<8x256xf32> to vector<1x8x256xf32>
    tpu.vector_store %arg6[%c0_8, %c0_9, %c0_10], %12 {strides = array<i32>} : memref<1x8x256xf32, #tpu.memory_space<vmem>>, vector<1x8x256xf32>,
    return
  }
  func.func @transform_0(%arg0: i32, %arg1: i32) -> (i32, i32, i32) {
    %c0_i32 = arith.constant 0 : i32
    %c0_i32_0 = arith.constant 0 : i32
    return %arg0, %c0_i32, %arg1 : i32, i32, i32
  }
  func.func @transform_1(%arg0: i32, %arg1: i32) -> (i32, i32) {
    %c0_i32 = arith.constant 0 : i32
    %c0_i32_0 = arith.constant 0 : i32
    %c0_i32_1 = arith.constant 0 : i32
    return %c0_i32, %c0_i32_0 : i32, i32
  }
  func.func @transform_2(%arg0: i32, %arg1: i32) -> (i32, i32) {
    %c0_i32 = arith.constant 0 : i32
    %c0_i32_0 = arith.constant 0 : i32
    %c0_i32_1 = arith.constant 0 : i32
    return %c0_i32, %c0_i32_0 : i32, i32
  }
  func.func @transform_3(%arg0: i32, %arg1: i32) -> (i32, i32) {
    %c0_i32 = arith.constant 0 : i32
    %c0_i32_0 = arith.constant 0 : i32
    %c0_i32_1 = arith.constant 0 : i32
    return %c0_i32, %c0_i32_0 : i32, i32
  }
  func.func @transform_4(%arg0: i32, %arg1: i32) -> (i32, i32, i32) {
    %c0_i32 = arith.constant 0 : i32
    %c0_i32_0 = arith.constant 0 : i32
    return %arg0, %c0_i32, %arg1 : i32, i32, i32
  }
}

module attributes {stable_mosaic.version = 11 : i64} {
  func.func @_conv_bn_kernel(%arg0: i32, %arg1: i32, %arg2: memref<1x72x256xbf16, #tpu.memory_space<vmem>>, %arg3: memref<8x72xbf16, #tpu.memory_space<vmem>>, %arg4: memref<8x1xf32, #tpu.memory_space<vmem>>, %arg5: memref<8x1xf32, #tpu.memory_space<vmem>>, %arg6: memref<1x8x256xf32, #tpu.memory_space<vmem>>) attributes {dimension_semantics = [#tpu.dimension_semantics<parallel>, #tpu.dimension_semantics<parallel>], iteration_bounds = array<i64: 2, 1>, scalar_prefetch = 0 : i64, scratch_operands = 0 : i64, tpu.core_type = #tpu.core_type<tc>, window_params = [{transform_indices = @transform_0, window_bounds = array<i64: 1, 72, 256>}, {pipeline_mode = #tpu.pipeline_mode<synchronous>, transform_indices = @transform_1, window_bounds = array<i64: 8, 72>}, {pipeline_mode = #tpu.pipeline_mode<synchronous>, transform_indices = @transform_2, window_bounds = array<i64: 8, 1>}, {pipeline_mode = #tpu.pipeline_mode<synchronous>, transform_indices = @transform_3, window_bounds = array<i64: 8, 1>}, {transform_indices = @transform_4, window_bounds = array<i64: 1, 8, 256>}]} {
    %c0 = arith.constant 0 : index
    %c0_0 = arith.constant 0 : index
    %0 = vector.load %arg3[%c0, %c0_0] : memref<8x72xbf16, #tpu.memory_space<vmem>>, vector<8x72xbf16>
    %c0_1 = arith.constant 0 : index
    %c0_2 = arith.constant 0 : index
    %c0_3 = arith.constant 0 : index
    %1 = vector.load %arg2[%c0_1, %c0_2, %c0_3] : memref<1x72x256xbf16, #tpu.memory_space<vmem>>, vector<1x72x256xbf16>
    %2 = vector.shape_cast %1 : vector<1x72x256xbf16> to vector<72x256xbf16>
    %cst = arith.constant dense<0.000000e+00> : vector<8x256xf32>
    %3 = tpu.matmul %0, %2, %cst {dimension_numbers = #tpu.dot_dimension_numbers<[1], [0], [0], [1], [0, 0, 1, 1], [], []>} : vector<8x72xbf16>, vector<72x256xbf16>, vector<8x256xf32> -> vector<8x256xf32>
    %c0_4 = arith.constant 0 : index
    %c0_5 = arith.constant 0 : index
    %4 = vector.load %arg4[%c0_4, %c0_5] : memref<8x1xf32, #tpu.memory_space<vmem>>, vector<8x1xf32>
    %5 = vector.broadcast %4 : vector<8x1xf32> to vector<8x256xf32>
    %6 = arith.mulf %3, %5 : vector<8x256xf32>
    %c0_6 = arith.constant 0 : index
    %c0_7 = arith.constant 0 : index
    %7 = vector.load %arg5[%c0_6, %c0_7] : memref<8x1xf32, #tpu.memory_space<vmem>>, vector<8x1xf32>
    %8 = vector.broadcast %7 : vector<8x1xf32> to vector<8x256xf32>
    %9 = arith.addf %6, %8 : vector<8x256xf32>
    %c0_8 = arith.constant 0 : index
    %c0_9 = arith.constant 0 : index
    %c0_10 = arith.constant 0 : index
    %10 = vector.load %arg6[%c0_8, %c0_9, %c0_10] : memref<1x8x256xf32, #tpu.memory_space<vmem>>, vector<1x8x256xf32>
    %11 = vector.shape_cast %10 : vector<1x8x256xf32> to vector<8x256xf32>
    %12 = vector.shape_cast %9 : vector<8x256xf32> to vector<1x8x256xf32>
    tpu.vector_store %arg6[%c0_8, %c0_9, %c0_10], %12 {strides = array<i32>} : memref<1x8x256xf32, #tpu.memory_space<vmem>>, vector<1x8x256xf32>,
    return
  }
  func.func @transform_0(%arg0: i32, %arg1: i32) -> (i32, i32, i32) {
    %c0_i32 = arith.constant 0 : i32
    %c0_i32_0 = arith.constant 0 : i32
    return %arg0, %c0_i32, %arg1 : i32, i32, i32
  }
  func.func @transform_1(%arg0: i32, %arg1: i32) -> (i32, i32) {
    %c0_i32 = arith.constant 0 : i32
    %c0_i32_0 = arith.constant 0 : i32
    %c0_i32_1 = arith.constant 0 : i32
    return %c0_i32, %c0_i32_0 : i32, i32
  }
  func.func @transform_2(%arg0: i32, %arg1: i32) -> (i32, i32) {
    %c0_i32 = arith.constant 0 : i32
    %c0_i32_0 = arith.constant 0 : i32
    %c0_i32_1 = arith.constant 0 : i32
    return %c0_i32, %c0_i32_0 : i32, i32
  }
  func.func @transform_3(%arg0: i32, %arg1: i32) -> (i32, i32) {
    %c0_i32 = arith.constant 0 : i32
    %c0_i32_0 = arith.constant 0 : i32
    %c0_i32_1 = arith.constant 0 : i32
    return %c0_i32, %c0_i32_0 : i32, i32
  }
  func.func @transform_4(%arg0: i32, %arg1: i32) -> (i32, i32, i32) {
    %c0_i32 = arith.constant 0 : i32
    %c0_i32_0 = arith.constant 0 : i32
    return %arg0, %c0_i32, %arg1 : i32, i32, i32
  }
}

module attributes {stable_mosaic.version = 11 : i64} {
  func.func @_conv_bn_kernel(%arg0: i32, %arg1: i32, %arg2: memref<1x8x256xbf16, #tpu.memory_space<vmem>>, %arg3: memref<4x8xbf16, #tpu.memory_space<vmem>>, %arg4: memref<4x1xf32, #tpu.memory_space<vmem>>, %arg5: memref<4x1xf32, #tpu.memory_space<vmem>>, %arg6: memref<1x4x256xf32, #tpu.memory_space<vmem>>) attributes {dimension_semantics = [#tpu.dimension_semantics<parallel>, #tpu.dimension_semantics<parallel>], iteration_bounds = array<i64: 2, 1>, scalar_prefetch = 0 : i64, scratch_operands = 0 : i64, tpu.core_type = #tpu.core_type<tc>, window_params = [{transform_indices = @transform_0, window_bounds = array<i64: 1, 8, 256>}, {pipeline_mode = #tpu.pipeline_mode<synchronous>, transform_indices = @transform_1, window_bounds = array<i64: 4, 8>}, {pipeline_mode = #tpu.pipeline_mode<synchronous>, transform_indices = @transform_2, window_bounds = array<i64: 4, 1>}, {pipeline_mode = #tpu.pipeline_mode<synchronous>, transform_indices = @transform_3, window_bounds = array<i64: 4, 1>}, {transform_indices = @transform_4, window_bounds = array<i64: 1, 4, 256>}]} {
    %c0 = arith.constant 0 : index
    %c0_0 = arith.constant 0 : index
    %0 = vector.load %arg3[%c0, %c0_0] : memref<4x8xbf16, #tpu.memory_space<vmem>>, vector<4x8xbf16>
    %c0_1 = arith.constant 0 : index
    %c0_2 = arith.constant 0 : index
    %c0_3 = arith.constant 0 : index
    %1 = vector.load %arg2[%c0_1, %c0_2, %c0_3] : memref<1x8x256xbf16, #tpu.memory_space<vmem>>, vector<1x8x256xbf16>
    %2 = vector.shape_cast %1 : vector<1x8x256xbf16> to vector<8x256xbf16>
    %cst = arith.constant dense<0.000000e+00> : vector<4x256xf32>
    %3 = tpu.matmul %0, %2, %cst {dimension_numbers = #tpu.dot_dimension_numbers<[1], [0], [0], [1], [0, 0, 1, 1], [], []>} : vector<4x8xbf16>, vector<8x256xbf16>, vector<4x256xf32> -> vector<4x256xf32>
    %c0_4 = arith.constant 0 : index
    %c0_5 = arith.constant 0 : index
    %4 = vector.load %arg4[%c0_4, %c0_5] : memref<4x1xf32, #tpu.memory_space<vmem>>, vector<4x1xf32>
    %5 = vector.broadcast %4 : vector<4x1xf32> to vector<4x256xf32>
    %6 = arith.mulf %3, %5 : vector<4x256xf32>
    %c0_6 = arith.constant 0 : index
    %c0_7 = arith.constant 0 : index
    %7 = vector.load %arg5[%c0_6, %c0_7] : memref<4x1xf32, #tpu.memory_space<vmem>>, vector<4x1xf32>
    %8 = vector.broadcast %7 : vector<4x1xf32> to vector<4x256xf32>
    %9 = arith.addf %6, %8 : vector<4x256xf32>
    %c0_8 = arith.constant 0 : index
    %c0_9 = arith.constant 0 : index
    %c0_10 = arith.constant 0 : index
    %10 = vector.load %arg6[%c0_8, %c0_9, %c0_10] : memref<1x4x256xf32, #tpu.memory_space<vmem>>, vector<1x4x256xf32>
    %11 = vector.shape_cast %10 : vector<1x4x256xf32> to vector<4x256xf32>
    %12 = vector.shape_cast %9 : vector<4x256xf32> to vector<1x4x256xf32>
    tpu.vector_store %arg6[%c0_8, %c0_9, %c0_10], %12 {strides = array<i32>} : memref<1x4x256xf32, #tpu.memory_space<vmem>>, vector<1x4x256xf32>,
    return
  }
  func.func @transform_0(%arg0: i32, %arg1: i32) -> (i32, i32, i32) {
    %c0_i32 = arith.constant 0 : i32
    %c0_i32_0 = arith.constant 0 : i32
    return %arg0, %c0_i32, %arg1 : i32, i32, i32
  }
  func.func @transform_1(%arg0: i32, %arg1: i32) -> (i32, i32) {
    %c0_i32 = arith.constant 0 : i32
    %c0_i32_0 = arith.constant 0 : i32
    %c0_i32_1 = arith.constant 0 : i32
    return %c0_i32, %c0_i32_0 : i32, i32
  }
  func.func @transform_2(%arg0: i32, %arg1: i32) -> (i32, i32) {
    %c0_i32 = arith.constant 0 : i32
    %c0_i32_0 = arith.constant 0 : i32
    %c0_i32_1 = arith.constant 0 : i32
    return %c0_i32, %c0_i32_0 : i32, i32
  }
  func.func @transform_3(%arg0: i32, %arg1: i32) -> (i32, i32) {
    %c0_i32 = arith.constant 0 : i32
    %c0_i32_0 = arith.constant 0 : i32
    %c0_i32_1 = arith.constant 0 : i32
    return %c0_i32, %c0_i32_0 : i32, i32
  }
  func.func @transform_4(%arg0: i32, %arg1: i32) -> (i32, i32, i32) {
    %c0_i32 = arith.constant 0 : i32
    %c0_i32_0 = arith.constant 0 : i32
    return %arg0, %c0_i32, %arg1 : i32, i32, i32
  }
}

</mosaic_0001>

<bundles_post_ra>
// kernel: hs_bottleneck_forward.4
= control target key start
LH: loop header
LB: loop body
LE: loop exit
PB: predicated region body
PF: predicated region fallthrough
CT: control target
= control target key end

     0   :  { %s530_s15 = smov 0   ;;  %s532_s16 = smov 0   ;;  %s576_s0 = inlined_call_operand.vmem [shape: bf16[2,40,256], index: 0, kind: input, shape index: {}]   ;;  %s577_s1 = inlined_call_operand.vmem [shape: bf16[8,40], index: 1, kind: input, shape index: {}]   ;;  %s578_s2 = inlined_call_operand.vmem [shape: f32[8,1], index: 2, kind: input, shape index: {}]   ;;  %s579_s3 = inlined_call_operand.vmem [shape: f32[8,1], index: 3, kind: input, shape index: {}]   ;;  %s580_s4 = inlined_call_operand.vmem [shape: f32[2,8,256], index: 4, kind: output, shape index: {}]  }
   0x1   :  { %s534_s17 = smov 0  }
   0x2 LB: > { %s26_s18 = sadd.s32 1, %s498_s16  ;;  %p430_p0 = scmp.ge.s32.totalorder %s502_s17, 1  ;;  %s502_s17 = sphi %s534_s17, %s14_s17   ;;  %s498_s16 = sphi %s532_s16, %s582_s16   ;;  %s494_s15 = sphi %s530_s15, %s581_s15  }
   0x3   : > { %p28_p1 = scmp.ge.s32.totalorder %s26_s18, 2  ;;  %p183_p2 = scmp.lt.s32.totalorder %s502_s17, 3 }
   0x5   : > { %s584_s18 = smov (%p28_p1, %s26_s18), 0  ;;  %p184_p3 = pnand %p430_p0, %p183_p2 }
   0x6   : > { %p218_p4 = scmp.lt.s32.totalorder (!%p184_p3), %s494_s15, 1 }
   0x7   : > { %187 = sbr.rel (%p184_p3) target bundleno = 231 (0xe7), region = 36 }
   0xc   : > { %v504_v0 = vmov 0   ;;  %v321_v1 = vld [vmem:[%s578_s2] sm:$0xff]  ;;  %s586_s15 = smov (!%p218_p4, %s494_s15), 1  ;;  %vm273_vm0 = vcmask 1043456   ;;  %vm269_vm1 = vcmask 326656  }
   0xd   : > { %312 = vmatprep.mubr.bf16.mxu0 %v504_v0  ;;  %471 = vset.pattern.permute.xlu0 %v504_v0  ;;  %v329_v2 = vld [vmem:[%s579_s3] sm:$0xff]  ;;  %s445_s23 = smul.u32 40, %s586_s15  ;;  %s444_s29 = sshll.u32 %s586_s15, 4 }
   0xe   : > { %324 = vperm.xlu0 %471, %v321_v1   ;;  %v238_v11 = vld [vmem:[%s577_s1] sm:$0xf]  ;;  %s235_s6 = scalar_lea.vmem %s580_s4, %s444_s29 }
   0xf   : > { %s225_s26 = scalar_lea.vmem %s576_s0, %s445_s23 }
  0x10   : > { %v243_v3 = vld [vmem:[%s225_s26 + $0x20] sm:$0xff]  ;;  %v474_v6 = vld [vmem:[%s225_s26 + $0x14] ss:$8 sps:$4 sm:$0xff]   ;;  %v476_v8 = vld [vmem:[%s225_s26 + $0x10] ss:$8 sps:$4 sm:$0xff]  }
  0x11   : > { %v439_v4 = vcombine.high %v243_v3, %v243_v3  ;;  %v438_v5 = vcombine.low %v243_v3, %v243_v3  ;;  %v477_v9 = vld [vmem:[%s225_s26 + $0x4] ss:$8 sps:$4 sm:$0xff]   ;;  %v479_v10 = vld [vmem:[%s225_s26] ss:$8 sps:$4 sm:$0xff]  }
  0x12   : > { %332 = vperm.xlu0 %471, %v329_v2  }
  0x13   : > { %440 = vmatprep.subr.msk.bf16.mxu0 %vm273_vm0, %v439_v4  ;;  %v275_v7 = vsel %vm273_vm0, %v438_v5, 0 }
  0x14   : > { %291 = vmatpush1.bf16.msra.mxu0 %v275_v7 }
  0x15   : > { %292 = vmatprep.subr.bf16.mxu0 %v474_v6 }
  0x18   : > { %293 = vmatpush1.bf16.msra.mxu0 %v476_v8 }
  0x19   : > { %294 = vmatprep.subr.bf16.mxu0 %v477_v9 }
  0x1c   : > { %295 = vmatpush1.bf16.msra.mxu0 %v479_v10 }
  0x1f   : > { %441 = vmatmul.mubr.msk.bf16.vlgmr.msra.gmra.mxu0 %vm269_vm1, %v238_v11 }
  0x89   : > { %v325_v12 = vpop.permute.xlu0 %324 }
  0x8d   : > { %v333_v15 = vpop.permute.xlu0 %332 }
  0xdf   : > { %v314_v13 = vpop.f32.mrf.mxu0 }
  0xe0   : > { %v327_v14 = vmul.f32 %v325_v12, %v314_v13 }
  0xe1   : > { %v316_v16 = vpop.f32.mrf.mxu0 }
  0xe2   : > { %v335_v17 = vadd.f32 %v333_v15, %v327_v14  ;;  %v328_v18 = vmul.f32 %v325_v12, %v316_v16 }
  0xe3   : > { %v318_v19 = vpop.f32.mrf.mxu0 }
  0xe4   : > { %337 = vst [vmem:[%s235_s6] sm:$0xff] %v335_v17  ;;  %v336_v20 = vadd.f32 %v333_v15, %v328_v18 }
  0xe5   : > { %v319_v21 = vpop.f32.mrf.mxu0 }
  0xe6   : > { %338 = vst [vmem:[%s235_s6 + $0x8] sm:$0xff] %v336_v20 }
  0xe7 PF: > { %s14_s17 = sadd.s32 1, %s502_s17   ;;  %s581_s15 = smov %s498_s16 }
  0xe8   : > { %p11_p5 = scmp.ge.s32.totalorder %s14_s17, 4   ;;  %s582_s16 = smov %s584_s18 }
  0xea   :  { %13 = sbr.rel (!%p11_p5) target bundleno = 2 (0x2), region = 66 }

// kernel: hs_bottleneck_forward.5
= control target key start
LH: loop header
LB: loop body
LE: loop exit
PB: predicated region body
PF: predicated region fallthrough
CT: control target
= control target key end

     0   :  { %s564_s15 = smov 0   ;;  %s566_s16 = smov 0   ;;  %s610_s0 = inlined_call_operand.vmem [shape: bf16[2,72,256], index: 0, kind: input, shape index: {}]   ;;  %s611_s1 = inlined_call_operand.vmem [shape: bf16[8,72], index: 1, kind: input, shape index: {}]   ;;  %s612_s2 = inlined_call_operand.vmem [shape: f32[8,1], index: 2, kind: input, shape index: {}]   ;;  %s613_s3 = inlined_call_operand.vmem [shape: f32[8,1], index: 3, kind: input, shape index: {}]   ;;  %s614_s4 = inlined_call_operand.vmem [shape: f32[2,8,256], index: 4, kind: output, shape index: {}]  }
   0x1   :  { %s568_s17 = smov 0  }
   0x2 LB: > { %s26_s18 = sadd.s32 1, %s532_s16  ;;  %p454_p0 = scmp.ge.s32.totalorder %s536_s17, 1  ;;  %s536_s17 = sphi %s568_s17, %s14_s17   ;;  %s532_s16 = sphi %s566_s16, %s616_s16   ;;  %s528_s15 = sphi %s564_s15, %s615_s15  }
   0x3   : > { %p28_p1 = scmp.ge.s32.totalorder %s26_s18, 2  ;;  %p183_p2 = scmp.lt.s32.totalorder %s536_s17, 3 }
   0x5   : > { %s618_s18 = smov (%p28_p1, %s26_s18), 0  ;;  %p184_p3 = pnand %p454_p0, %p183_p2 }
   0x6   : > { %p218_p4 = scmp.lt.s32.totalorder (!%p184_p3), %s528_s15, 1 }
   0x7   : > { %187 = sbr.rel (%p184_p3) target bundleno = 239 (0xef), region = 36 }
   0xc   : > { %v538_v0 = vmov 0   ;;  %v345_v1 = vld [vmem:[%s612_s2] sm:$0xff]  ;;  %s620_s15 = smov (!%p218_p4, %s528_s15), 1  ;;  %vm297_vm0 = vcmask 1043456   ;;  %vm293_vm1 = vcmask 588800  }
   0xd   : > { %336 = vmatprep.mubr.bf16.mxu0 %v538_v0  ;;  %499 = vset.pattern.permute.xlu0 %v538_v0  ;;  %v353_v2 = vld [vmem:[%s613_s3] sm:$0xff]  ;;  %s473_s23 = smul.u32 72, %s620_s15  ;;  %s472_s29 = sshll.u32 %s620_s15, 4 }
   0xe   : > { %348 = vperm.xlu0 %499, %v345_v1   ;;  %v238_v15 = vld [vmem:[%s611_s1] sm:$0xf]  ;;  %s235_s6 = scalar_lea.vmem %s614_s4, %s472_s29 }
   0xf   : > { %s225_s26 = scalar_lea.vmem %s610_s0, %s473_s23 }
  0x10   : > { %v247_v3 = vld [vmem:[%s225_s26 + $0x40] sm:$0xff]  ;;  %v502_v6 = vld [vmem:[%s225_s26 + $0x34] ss:$8 sps:$4 sm:$0xff]   ;;  %v504_v8 = vld [vmem:[%s225_s26 + $0x30] ss:$8 sps:$4 sm:$0xff]  }
  0x11   : > { %v467_v4 = vcombine.high %v247_v3, %v247_v3  ;;  %v466_v5 = vcombine.low %v247_v3, %v247_v3  ;;  %v505_v9 = vld [vmem:[%s225_s26 + $0x24] ss:$8 sps:$4 sm:$0xff]   ;;  %v507_v10 = vld [vmem:[%s225_s26 + $0x20] ss:$8 sps:$4 sm:$0xff]   ;;  %v508_v11 = vld [vmem:[%s225_s26 + $0x14] ss:$8 sps:$4 sm:$0xff]  }
  0x12   : > { %356 = vperm.xlu0 %499, %v353_v2   ;;  %v510_v12 = vld [vmem:[%s225_s26 + $0x10] ss:$8 sps:$4 sm:$0xff]   ;;  %v511_v13 = vld [vmem:[%s225_s26 + $0x4] ss:$8 sps:$4 sm:$0xff]   ;;  %v513_v14 = vld [vmem:[%s225_s26] ss:$8 sps:$4 sm:$0xff]  }
  0x13   : > { %468 = vmatprep.subr.msk.bf16.mxu0 %vm297_vm0, %v467_v4  ;;  %v299_v7 = vsel %vm297_vm0, %v466_v5, 0 }
  0x14   : > { %311 = vmatpush1.bf16.msra.mxu0 %v299_v7 }
  0x15   : > { %312 = vmatprep.subr.bf16.mxu0 %v502_v6 }
  0x18   : > { %313 = vmatpush1.bf16.msra.mxu0 %v504_v8 }
  0x19   : > { %314 = vmatprep.subr.bf16.mxu0 %v505_v9 }
  0x1c   : > { %315 = vmatpush1.bf16.msra.mxu0 %v507_v10 }
  0x1d   : > { %316 = vmatprep.subr.bf16.mxu0 %v508_v11 }
  0x20   : > { %317 = vmatpush1.bf16.msra.mxu0 %v510_v12 }
  0x21   : > { %318 = vmatprep.subr.bf16.mxu0 %v511_v13 }
  0x24   : > { %319 = vmatpush1.bf16.msra.mxu0 %v513_v14 }
  0x27   : > { %469 = vmatmul.mubr.msk.bf16.vlgmr.msra.gmra.mxu0 %vm293_vm1, %v238_v15 }
  0x89   : > { %v349_v16 = vpop.permute.xlu0 %348 }
  0x8d   : > { %v357_v19 = vpop.permute.xlu0 %356 }
  0xe7   : > { %v338_v17 = vpop.f32.mrf.mxu0 }
  0xe8   : > { %v351_v18 = vmul.f32 %v349_v16, %v338_v17 }
  0xe9   : > { %v340_v20 = vpop.f32.mrf.mxu0 }
  0xea   : > { %v359_v21 = vadd.f32 %v357_v19, %v351_v18  ;;  %v352_v22 = vmul.f32 %v349_v16, %v340_v20 }
  0xeb   : > { %v342_v23 = vpop.f32.mrf.mxu0 }
  0xec   : > { %361 = vst [vmem:[%s235_s6] sm:$0xff] %v359_v21  ;;  %v360_v24 = vadd.f32 %v357_v19, %v352_v22 }
  0xed   : > { %v343_v25 = vpop.f32.mrf.mxu0 }
  0xee   : > { %362 = vst [vmem:[%s235_s6 + $0x8] sm:$0xff] %v360_v24 }
  0xef PF: > { %s14_s17 = sadd.s32 1, %s536_s17   ;;  %s615_s15 = smov %s532_s16 }
  0xf0   : > { %p11_p5 = scmp.ge.s32.totalorder %s14_s17, 4   ;;  %s616_s16 = smov %s618_s18 }
  0xf2   :  { %13 = sbr.rel (!%p11_p5) target bundleno = 2 (0x2), region = 66 }

// kernel: hs_bottleneck_forward.7
= control target key start
LH: loop header
LB: loop body
LE: loop exit
PB: predicated region body
PF: predicated region fallthrough
CT: control target
= control target key end

     0   :  { %s500_s15 = smov 0   ;;  %s502_s16 = smov 0   ;;  %s542_s0 = inlined_call_operand.vmem [shape: bf16[2,8,256], index: 0, kind: input, shape index: {}]   ;;  %s543_s1 = inlined_call_operand.vmem [shape: bf16[4,8], index: 1, kind: input, shape index: {}]   ;;  %s544_s2 = inlined_call_operand.vmem [shape: f32[4,1], index: 2, kind: input, shape index: {}]   ;;  %s545_s3 = inlined_call_operand.vmem [shape: f32[4,1], index: 3, kind: input, shape index: {}]   ;;  %s546_s4 = inlined_call_operand.vmem [shape: f32[2,4,256], index: 4, kind: output, shape index: {}]  }
   0x1   :  { %s504_s17 = smov 0  }
   0x2 LB: > { %s26_s18 = sadd.s32 1, %s468_s16  ;;  %p409_p0 = scmp.ge.s32.totalorder %s472_s17, 1  ;;  %s472_s17 = sphi %s504_s17, %s14_s17   ;;  %s468_s16 = sphi %s502_s16, %s548_s16   ;;  %s464_s15 = sphi %s500_s15, %s547_s15  }
   0x3   : > { %p28_p1 = scmp.ge.s32.totalorder %s26_s18, 2  ;;  %p183_p2 = scmp.lt.s32.totalorder %s472_s17, 3 }
   0x5   : > { %s550_s18 = smov (%p28_p1, %s26_s18), 0  ;;  %p184_p3 = pnand %p409_p0, %p183_p2 }
   0x6   : > { %p218_p4 = scmp.lt.s32.totalorder (!%p184_p3), %s464_s15, 1 }
   0x7   : > { %187 = sbr.rel (%p184_p3) target bundleno = 224 (0xe0), region = 36 }
   0xc   : > { %v474_v0 = vmov 0   ;;  %v297_v1 = vld [vmem:[%s544_s2] sm:$0xf]  ;;  %s552_s15 = smov (!%p218_p4, %s464_s15), 1  ;;  %vm249_vm0 = vcmask 1043456   ;;  %vm245_vm1 = vcmask 64512  }
   0xd   : > { %288 = vmatprep.mubr.bf16.mxu0 %v474_v0  ;;  %447 = vset.pattern.permute.xlu0 %v474_v0  ;;  %v305_v2 = vld [vmem:[%s545_s3] sm:$0xf]  ;;  %s420_s23 = sshll.u32 %s552_s15, 3 }
   0xe   : > { %300 = vperm.xlu0 %447, %v297_v1   ;;  %s225_s26 = scalar_lea.vmem %s542_s0, %s420_s23  ;;  %v238_v7 = vld [vmem:[%s543_s1] sm:$0x3]  ;;  %s235_s5 = scalar_lea.vmem %s546_s4, %s420_s23 }
   0xf   : > { %v239_v3 = vld [vmem:[%s225_s26] sm:$0xff] }
  0x10   : > { %v415_v4 = vcombine.high %v239_v3, %v239_v3  ;;  %v414_v5 = vcombine.low %v239_v3, %v239_v3 }
  0x12   : > { %308 = vperm.xlu0 %447, %v305_v2   ;;  %416 = vmatprep.subr.msk.bf16.mxu0 %vm249_vm0, %v415_v4  ;;  %v251_v6 = vsel %vm249_vm0, %v414_v5, 0 }
  0x13   : > { %271 = vmatpush1.bf16.msra.mxu0 %v251_v6 }
  0x16   : > { %417 = vmatmul.mubr.msk.bf16.vlgmr.msra.gmra.mxu0 %vm245_vm1, %v238_v7 }
  0x89   : > { %v301_v8 = vpop.permute.xlu0 %300 }
  0x8d   : > { %v309_v13 = vpop.permute.xlu0 %308 }
  0xd6   : > { %v290_v9 = vpop.f32.mrf.mxu0 }
  0xd7   : > { %v303_v10 = vmul.f32 %v301_v8, %v290_v9 }
  0xd8   : > { %v292_v11 = vpop.f32.mrf.mxu0 }
  0xd9   : > { %v304_v12 = vmul.f32 %v301_v8, %v292_v11  ;;  %v311_v15 = vadd.f32 %v309_v13, %v303_v10 }
  0xda   : > { %v294_v14 = vpop.f32.mrf.mxu0 }
  0xdb   : > { %v312_v16 = vadd.f32 %v309_v13, %v304_v12 }
  0xdc   : > { %v295_v17 = vpop.f32.mrf.mxu0 }
  0xdd   : > { %v315_v18 = vcombine.low %v311_v15, %v312_v16 }
  0xdf   : > { %317 = vst [vmem:[%s235_s5] sm:$0xff] %v315_v18 }
  0xe0 PF: > { %s14_s17 = sadd.s32 1, %s472_s17   ;;  %s547_s15 = smov %s468_s16 }
  0xe1   : > { %p11_p5 = scmp.ge.s32.totalorder %s14_s17, 4   ;;  %s548_s16 = smov %s550_s18 }
  0xe3   :  { %13 = sbr.rel (!%p11_p5) target bundleno = 2 (0x2), region = 66 }

</bundles_post_ra>
